<compile_context>
chip_gen: v5e
topology: v5e:2x2
jax: 0.10.0
libtpu: 0.0.40
codegen_flags: <defaults>
</compile_context>

<pallas_src>
import jax
import jax.numpy as jnp
from jax.experimental import pallas as pl
from jax.experimental.pallas import tpu as pltpu


def _identity_kernel(x_ref, o_ref):
    # DummyLayerNorm.forward(x) == x → pure elementwise pass-through.
    o_ref[...] = x_ref[...]


# ~8 MiB per block: 2 inputs-side + 2 output-side double-buffered blocks
# ≈ 32 MiB live, under the 48 MiB scoped limit below on every chip generation.
_TARGET_BLOCK_BYTES = 8 * 1024 * 1024
_VMEM_LIMIT_BYTES = 48 * 1024 * 1024


def _sublane_for_dtype(dtype):
    """Native sublane packing: 8 rows for 32-bit, 16 for 16-bit, 32 for 8-bit."""
    itemsize = jnp.dtype(dtype).itemsize
    if itemsize >= 4:
        return 8
    if itemsize == 2:
        return 16
    return 32


def _pick_lane_width(total, sublane):
    """Widest 128-multiple lane width dividing `total` (prefer rows >= sublane)."""
    candidates = [l for l in (1024, 512, 256, 128) if total % l == 0]
    if not candidates:
        return None
    for lanes in candidates:
        if total // lanes >= sublane:
            return lanes
    return candidates[-1]  # tiny tensor: narrowest candidate → most rows


def _pick_row_tile(rows, row_bytes, sublane):
    """Largest sublane-aligned row tile giving ~_TARGET_BLOCK_BYTES blocks."""
    if rows <= sublane:
        return rows  # block row dim equals full array dim → always legal
    target = max(sublane, _TARGET_BLOCK_BYTES // max(row_bytes, 1))
    tile = min(rows, target)
    tile -= tile % sublane  # native-tile aligned → unmasked DMA / vst path
    return max(tile, sublane)


def _identity_copy_2d(x2, tile_rows):
    rows, cols = x2.shape
    grid = (pl.cdiv(rows, tile_rows),)
    itemsize = jnp.dtype(x2.dtype).itemsize
    cost = pl.CostEstimate(
        flops=0,
        transcendentals=0,
        bytes_accessed=2 * rows * cols * itemsize,
    )
    return pl.pallas_call(
        _identity_kernel,
        out_shape=jax.ShapeDtypeStruct((rows, cols), x2.dtype),
        grid_spec=pltpu.PrefetchScalarGridSpec(
            num_scalar_prefetch=0,
            grid=grid,
            in_specs=[pl.BlockSpec((tile_rows, cols), lambda i: (i, 0))],
            out_specs=pl.BlockSpec((tile_rows, cols), lambda i: (i, 0)),
        ),
        cost_estimate=cost,
        compiler_params=pltpu.CompilerParams(
            dimension_semantics=("parallel",),  # megacore-shardable on v7x
            vmem_limit_bytes=_VMEM_LIMIT_BYTES,
        ),
    )(x2)


def dummy_layer_norm(x, eps=1e-05):
    """Pallas implementation of DummyLayerNorm.forward (identity)."""
    del eps  # unused — the PyTorch module has no parameters and no compute
    orig_shape = x.shape
    total = x.size
    if total == 0:
        return x

    sublane = _sublane_for_dtype(x.dtype)
    lanes = _pick_lane_width(total, sublane)
    if lanes is None:
        # Element count not a multiple of 128: a kernel would only produce
        # masked partial stores / tiny DMAs for an identity op — skip it.
        return x

    itemsize = jnp.dtype(x.dtype).itemsize
    rows = total // lanes
    x2 = x.reshape(rows, lanes)
    tile_rows = _pick_row_tile(rows, lanes * itemsize, sublane)
    out2 = _identity_copy_2d(x2, tile_rows)
    return out2.reshape(orig_shape)


if __name__ == "__main__":
    key = jax.random.PRNGKey(0)
    batch, seq, hidden = 2, 8, 32
    x = jax.random.normal(key, (batch, seq, hidden), dtype=jnp.float32)

    y = dummy_layer_norm(x)
    jax.block_until_ready(y)

    assert y.shape == x.shape and y.dtype == x.dtype
    assert bool(jnp.all(y == x))
    print("KERNEL_OK")
</pallas_src>

<mosaic_0001>
module attributes {stable_mosaic.version = 11 : i64} {
  func.func @_identity_kernel(%arg0: i32, %arg1: memref<4x128xf32, #tpu.memory_space<vmem>>, %arg2: memref<4x128xf32, #tpu.memory_space<vmem>>) attributes {dimension_semantics = [#tpu.dimension_semantics<parallel>], iteration_bounds = array<i64: 1>, scalar_prefetch = 0 : i64, scratch_operands = 0 : i64, tpu.core_type = #tpu.core_type<tc>, window_params = [{transform_indices = @transform_0, window_bounds = array<i64: 4, 128>}, {transform_indices = @transform_1, window_bounds = array<i64: 4, 128>}]} {
    %c0 = arith.constant 0 : index
    %c0_0 = arith.constant 0 : index
    %0 = vector.load %arg1[%c0, %c0_0] : memref<4x128xf32, #tpu.memory_space<vmem>>, vector<4x128xf32>
    %c0_1 = arith.constant 0 : index
    %c0_2 = arith.constant 0 : index
    %1 = vector.load %arg2[%c0_1, %c0_2] : memref<4x128xf32, #tpu.memory_space<vmem>>, vector<4x128xf32>
    tpu.vector_store %arg2[%c0_1, %c0_2], %0 {strides = array<i32>} : memref<4x128xf32, #tpu.memory_space<vmem>>, vector<4x128xf32>,
    return
  }
  func.func @transform_0(%arg0: i32) -> (i32, i32) {
    %c0_i32 = arith.constant 0 : i32
    %c0_i32_0 = arith.constant 0 : i32
    return %arg0, %c0_i32 : i32, i32
  }
  func.func @transform_1(%arg0: i32) -> (i32, i32) {
    %c0_i32 = arith.constant 0 : i32
    %c0_i32_0 = arith.constant 0 : i32
    return %arg0, %c0_i32 : i32, i32
  }
}

</mosaic_0001>

<bundles_post_ra>
// kernel: tpu_custom_call.1
= control target key start
LH: loop header
LB: loop body
LE: loop exit
PB: predicated region body
PF: predicated region fallthrough
CT: control target
= control target key end

     0   :  { %6 = vsyncpa [#allocation3], 0  ;;  %s114_s0 = inlined_call_operand.hbm [shape: f32[4,128], index: 0, kind: input, shape index: {}]   ;;  %s115_s1 = inlined_call_operand.hbm [shape: f32[4,128], index: 1, kind: output, shape index: {}]  }
   0x1   :  { %7 = vsyncpa [#allocation4], 0  ;;  %s13_s8 = sshll.u32 %s114_s0, 4  ;;  %s96_s9 = smov [#allocation2]   ;;  %s14_s8 = int_to_ptr.hbm [resolvable:$true] %s13_s8 }
   0x2   :  { %s15_s10 = sshll.u32 %s96_s9, 4  ;;  %s16_s10 = int_to_ptr.vmem [resolvable:$true] %s15_s10 }
   0x3   :  { %18 = dma.hbm_to_vmem [thread:$0]  %s14_s8, 64, %s16_s10, [#allocation3]  }
   0x4   :  { %92 = dma.done.wait [#allocation3], 64  }
   0x5   :  { %93 = vsyncadd [#allocation3], 4294967232  ;;  %s97_s11 = smov [#allocation5]   ;;  %s32_s15 = sshll.u32 %s115_s1, 4  ;;  %v23_v0 = vld [vmem:[#allocation2] sm:$0xf]  ;;  %s33_s15 = int_to_ptr.hbm [resolvable:$true] %s32_s15 }
   0x6   :  { %s30_s12 = sshll.u32 %s97_s11, 4  ;;  %24 = vst [vmem:[#allocation5] sm:$0xf] %v23_v0  ;;  %s31_s12 = int_to_ptr.vmem [resolvable:$true] %s30_s12 }
   0x7   :  { %35 = dma.vmem_to_hbm [thread:$0]  %s31_s12, 64, %s33_s15, [#allocation4]  }
   0x8   :  { %94 = dma.done.wait [#allocation4], 64  }
   0x9   :  { %95 = vsyncadd [#allocation4], 4294967232 }
   0xa   :  { %40 = vsyncpa [#allocation3], 1 }
   0xb   :  { %41 = vsyncpa [#allocation4], 1 }

</bundles_post_ra>
